<compile_context>
chip_gen: v5e
topology: v5e:2x2
jax: 0.10.0
libtpu: 0.0.40
codegen_flags: <defaults>
</compile_context>

<pallas_src>
import functools

import jax
import jax.numpy as jnp
from jax import lax
from jax.experimental import pallas as pl
from jax.experimental.pallas import tpu as pltpu


# ----------------------------- Pallas kernel ---------------------------------
def _double_conv_kernel(x_ref, wb1_ref, b1_ref, wb2_ref, b2_ref, o_ref, p2_ref, *,
                        B_blk, H, L_in, L_mid, L_out, neg_slope, mxu_dtype):
    """Fused (conv3x3 pad=1 -> LeakyReLU) x 2 over a stack of B_blk images.

    x_ref   : (B_blk*(H+2), L_in)   H-padded input stack (zero seam rows), f32
    wb1_ref : (3, L_in,  L_mid)     banded stage-1 weights (one slab per kh), bf16
    b1_ref  : (1, L_mid)            stage-1 bias tiled over W, f32
    wb2_ref : (3, L_mid, L_out)     banded stage-2 weights, bf16
    b2_ref  : (1, L_out)            stage-2 bias tiled over W, f32
    o_ref   : (B_blk*H, L_out)      output, lane-dense last dim
    p2_ref  : (B_blk*(H+2), L_mid)  scratch: H-padded stage-1 activation stack (f32)
    """
    f32 = jnp.float32
    Hp = H + 2
    M_pad = B_blk * Hp            # rows in the H-padded image stack
    M_y = M_pad - 2               # conv output rows (valid rows + per-image junk seam rows)

    def leaky(v):
        return jnp.where(v > 0, v, neg_slope * v)

    # ------------- stage 1: conv1 (3 banded MXU matmuls, K = L_in) -------------
    acc1 = jnp.broadcast_to(b1_ref[...].astype(f32), (M_y, L_mid))   # bias folded into init
    for kh in range(3):
        acc1 = acc1 + jnp.dot(x_ref[kh:kh + M_y, :].astype(mxu_dtype), wb1_ref[kh],
                              preferred_element_type=f32)
    act1 = leaky(acc1)
    # Zero the "junk" rows that straddle two images; they double as the zero seam rows
    # of the stage-2 padded stack below.
    row = lax.broadcasted_iota(jnp.int32, (M_y, 1), 0)
    act1 = jnp.where((row % Hp) < H, act1, 0.0)

    # Stage-1 activation stays in VMEM (full fusion): build the H-padded stage-2 stack.
    zero_mid = jnp.zeros((1, L_mid), p2_ref.dtype)
    p2_ref[0:1, :] = zero_mid                      # top pad of first image
    p2_ref[M_pad - 1:M_pad, :] = zero_mid          # bottom pad of last image
    p2_ref[1:M_pad - 1, :] = act1                  # interiors + (masked) shared seams

    # ------------- stage 2: conv2 (3 banded MXU matmuls, K = L_mid) -------------
    acc2 = jnp.broadcast_to(b2_ref[...].astype(f32), (M_y, L_out))
    for kh in range(3):
        acc2 = acc2 + jnp.dot(p2_ref[kh:kh + M_y, :].astype(mxu_dtype), wb2_ref[kh],
                              preferred_element_type=f32)
    y = leaky(acc2)

    # Lane-dense per-image stores (skip the seam/junk rows).
    for b in range(B_blk):
        o_ref[b * H:(b + 1) * H, :] = y[b * Hp:b * Hp + H, :].astype(o_ref.dtype)


# ----------------------- banded-weight construction ---------------------------
def _make_banded_weights(w_hwio, W, n_rows, n_cols, dtype):
    """Fold the kw taps, the Cin->Cout contraction and the W zero-padding of a 3x3 'same'
    conv into one banded matrix per kernel row kh, zero-padded to (n_rows, n_cols):

      out[kh, win*Cin + c, wo*Cout + o] = w_hwio[kh, kw, c, o]  with win = wo + kw - 1,
    entries with win outside [0, W) dropped (== zero padding along W).
    """
    KH, KW, Cin, Cout = w_hwio.shape
    pad = (KW - 1) // 2
    banded = jnp.zeros((KH, W, Cin, W, Cout), jnp.float32)
    for kw in range(KW):
        # shift[win, wo] = 1  iff  win == wo + kw - pad (both in range)
        shift = jnp.eye(W, W, k=pad - kw, dtype=jnp.float32)
        banded = banded + jnp.einsum('iw,hco->hicwo', shift, w_hwio[:, kw].astype(jnp.float32))
    banded = banded.reshape(KH, W * Cin, W * Cout)
    banded = jnp.pad(banded, ((0, 0), (0, n_rows - W * Cin), (0, n_cols - W * Cout)))
    return banded.astype(dtype)


def _tile_bias(b, W, n_cols):
    bt = jnp.tile(b.astype(jnp.float32), W)            # lane layout: w*C + c
    bt = jnp.pad(bt, (0, n_cols - bt.shape[0]))
    return bt.reshape(1, n_cols)


# --------------------------- SpectralNorm (glue) ------------------------------
def spectral_normalize(w_oihw, u, n_power_iterations=1, eps=1e-12):
    """PyTorch-style spectral norm: W / sigma, sigma via power iteration on W.view(O, -1)."""
    O = w_oihw.shape[0]
    w_mat = w_oihw.reshape(O, -1)

    def _l2norm(v):
        return v / (jnp.linalg.norm(v) + eps)

    v = None
    for _ in range(n_power_iterations):
        v = _l2norm(w_mat.T @ u)
        u = _l2norm(w_mat @ v)
    sigma = u @ (w_mat @ v)
    return w_oihw / sigma


# ------------------------------ helpers ---------------------------------------
def _round_up(x, m):
    return (x + m - 1) // m * m


def _pick_block_batch(N, H):
    """How many images to fold into one grid step (the MXU M dimension)."""
    if N <= 8:
        return N                           # block == full batch: single (or few) grid steps
    for b in (16, 8):                      # keep B_blk*(H+2) sublane-tileable when batch is split
        if N % b == 0 and (b * (H + 2)) % 8 == 0:
            return b
    return N                               # TODO(synk): row-block grid with halo for very large N*H


def _vmem_limit_bytes():
    """Size the scoped VMEM limit per generation (v5e/v6e: 128 MiB, v7x: 64 MiB physical)."""
    try:
        cap = pltpu.get_tpu_info().vmem_capacity_bytes
    except Exception:
        cap = 64 * 1024 * 1024
    return int(min(0.75 * cap, 100 * 1024 * 1024))


# ------------------------------ double_conv -----------------------------------
def init_double_conv_params(key, in_ch, out_ch):
    k1, k2, k3, k4, k5, k6 = jax.random.split(key, 6)

    def conv_init(kw_, kb_, cin, cout):
        bound = 1.0 / jnp.sqrt(cin * 9.0)
        w = jax.random.uniform(kw_, (cout, cin, 3, 3), jnp.float32, -bound, bound)
        b = jax.random.uniform(kb_, (cout,), jnp.float32, -bound, bound)
        return w, b

    w1, b1 = conv_init(k1, k2, in_ch, out_ch)
    w2, b2 = conv_init(k3, k4, out_ch, out_ch)
    u1 = jax.random.normal(k5, (out_ch,), jnp.float32)
    u1 = u1 / (jnp.linalg.norm(u1) + 1e-12)
    u2 = jax.random.normal(k6, (out_ch,), jnp.float32)
    u2 = u2 / (jnp.linalg.norm(u2) + 1e-12)
    return {"w1": w1, "b1": b1, "u1": u1, "w2": w2, "b2": b2, "u2": u2}


def double_conv_forward_nhwc(params, x_nhwc, *, mxu_dtype=jnp.bfloat16, block_batch=None):
    """(SpectralNorm(conv3x3 same) -> LeakyReLU) x 2, NHWC in / NHWC out (no HBM relayouts)."""
    N, H, W, Cin = x_nhwc.shape

    # Spectral normalization of the weights (tiny scalar-scale glue, plain JAX).
    w1n = spectral_normalize(params["w1"], params["u1"])
    w2n = spectral_normalize(params["w2"], params["u2"])
    w1_hwio = jnp.transpose(w1n, (2, 3, 1, 0))          # (3,3,Cin,Cmid)
    w2_hwio = jnp.transpose(w2n, (2, 3, 1, 0))          # (3,3,Cmid,Cout)
    Cmid, Cout = w1_hwio.shape[-1], w2_hwio.shape[-1]

    # Lane-dense (multiple-of-128) lane dims; padding is all zeros so results are exact.
    L_in = _round_up(W * Cin, 128)
    L_mid = _round_up(W * Cmid, 128)
    L_out = _round_up(W * Cout, 128)

    wb1 = _make_banded_weights(w1_hwio, W, L_in, L_mid, mxu_dtype)    # (3, L_in,  L_mid) bf16
    wb2 = _make_banded_weights(w2_hwio, W, L_mid, L_out, mxu_dtype)   # (3, L_mid, L_out) bf16
    b1t = _tile_bias(params["b1"], W, L_mid)
    b2t = _tile_bias(params["b2"], W, L_out)

    # (N,H,W,Cin) -> H-padded, lane-padded (N*(H+2), L_in) slab.  XLA fuses this with the cast;
    # it replaces the previous version's in-kernel padded staging copies.
    x2 = x_nhwc.reshape(N, H, W * Cin).astype(jnp.float32)
    x2 = jnp.pad(x2, ((0, 0), (1, 1), (0, L_in - W * Cin)))
    x2 = x2.reshape(N * (H + 2), L_in)

    B_blk = _pick_block_batch(N, H) if block_batch is None else block_batch
    assert N % B_blk == 0, "block_batch must divide the batch size"
    grid_n = N // B_blk
    M_pad = B_blk * (H + 2)

    kernel = functools.partial(
        _double_conv_kernel, B_blk=B_blk, H=H, L_in=L_in, L_mid=L_mid, L_out=L_out,
        neg_slope=0.01, mxu_dtype=mxu_dtype)

    out2d = pl.pallas_call(
        kernel,
        out_shape=jax.ShapeDtypeStruct((N * H, L_out), x_nhwc.dtype),
        grid_spec=pltpu.PrefetchScalarGridSpec(
            num_scalar_prefetch=0,
            grid=(grid_n,),                                            # B_blk images per grid step
            in_specs=[
                pl.BlockSpec((M_pad, L_in), lambda n: (n, 0)),         # pipelined image-stack block
                pl.BlockSpec((3, L_in, L_mid), lambda n: (0, 0, 0)),   # weights stay resident
                pl.BlockSpec((1, L_mid), lambda n: (0, 0)),
                pl.BlockSpec((3, L_mid, L_out), lambda n: (0, 0, 0)),
                pl.BlockSpec((1, L_out), lambda n: (0, 0)),
            ],
            out_specs=pl.BlockSpec((B_blk * H, L_out), lambda n: (n, 0)),   # lane-dense stores
            scratch_shapes=[
                pltpu.VMEM((M_pad, L_mid), jnp.float32),               # H-padded stage-1 activation
            ],
        ),
        compiler_params=pltpu.CompilerParams(
            dimension_semantics=("parallel",),        # batch blocks shard across TCs (v7x megacore)
            vmem_limit_bytes=_vmem_limit_bytes(),     # per-generation VMEM budget
        ),
    )(x2, wb1, b1t, wb2, b2t)

    out = out2d.reshape(N, H, L_out)[..., :W * Cout]
    return out.reshape(N, H, W, Cout)


def double_conv_forward(params, x_nchw):
    """PyTorch-layout (NCHW) wrapper.  Prefer double_conv_forward_nhwc: these two transposes
    are full HBM relayout passes that the fused kernel otherwise avoids."""
    x_nhwc = jnp.transpose(x_nchw, (0, 2, 3, 1))
    out = double_conv_forward_nhwc(params, x_nhwc)
    return jnp.transpose(out, (0, 3, 1, 2))


# ------------------------------ reference -------------------------------------
def _reference_forward(params, x_nchw):
    w1n = spectral_normalize(params["w1"], params["u1"])
    w2n = spectral_normalize(params["w2"], params["u2"])

    def conv_lrelu(x, w, b):
        y = lax.conv_general_dilated(
            x, w, window_strides=(1, 1), padding=((1, 1), (1, 1)),
            dimension_numbers=("NCHW", "OIHW", "NCHW"))
        y = y + b[None, :, None, None]
        return jnp.where(y > 0, y, 0.01 * y)

    x = conv_lrelu(x_nchw, w1n, params["b1"])
    x = conv_lrelu(x, w2n, params["b2"])
    return x


if __name__ == "__main__":
    key = jax.random.PRNGKey(0)
    kp, kx = jax.random.split(key)

    in_ch, out_ch = 4, 8
    N, H, W = 2, 16, 16

    params = init_double_conv_params(kp, in_ch, out_ch)
    x = jax.random.normal(kx, (N, in_ch, H, W), jnp.float32)

    fwd = jax.jit(double_conv_forward)
    out = jax.block_until_ready(fwd(params, x))

    ref = _reference_forward(params, x)
    assert out.shape == (N, out_ch, H, W)
    # bf16 MXU operands (f32 accumulation) -> relaxed tolerance vs the f32 XLA reference.
    max_err = jnp.max(jnp.abs(out - ref))
    assert jnp.allclose(out, ref, atol=3e-2, rtol=3e-2), \
        f"mismatch vs XLA reference (max abs err = {max_err})"

    print("KERNEL_OK")
</pallas_src>

<mosaic_0001>
module attributes {stable_mosaic.version = 11 : i64} {
  func.func @_double_conv_kernel(%arg0: i32, %arg1: memref<36x128xf32, #tpu.memory_space<vmem>>, %arg2: memref<3x128x128xbf16, #tpu.memory_space<vmem>>, %arg3: memref<1x128xf32, #tpu.memory_space<vmem>>, %arg4: memref<3x128x128xbf16, #tpu.memory_space<vmem>>, %arg5: memref<1x128xf32, #tpu.memory_space<vmem>>, %arg6: memref<32x128xf32, #tpu.memory_space<vmem>>, %arg7: memref<36x128xf32, #tpu.memory_space<vmem>>) attributes {dimension_semantics = [#tpu.dimension_semantics<parallel>], iteration_bounds = array<i64: 1>, scalar_prefetch = 0 : i64, scratch_operands = 1 : i64, tpu.core_type = #tpu.core_type<tc>, window_params = [{transform_indices = @transform_0, window_bounds = array<i64: 36, 128>}, {pipeline_mode = #tpu.pipeline_mode<synchronous>, transform_indices = @transform_1, window_bounds = array<i64: 3, 128, 128>}, {pipeline_mode = #tpu.pipeline_mode<synchronous>, transform_indices = @transform_2, window_bounds = array<i64: 1, 128>}, {pipeline_mode = #tpu.pipeline_mode<synchronous>, transform_indices = @transform_3, window_bounds = array<i64: 3, 128, 128>}, {pipeline_mode = #tpu.pipeline_mode<synchronous>, transform_indices = @transform_4, window_bounds = array<i64: 1, 128>}, {transform_indices = @transform_5, window_bounds = array<i64: 32, 128>}]} {
    %c0 = arith.constant 0 : index
    %c0_0 = arith.constant 0 : index
    %0 = vector.load %arg3[%c0, %c0_0] : memref<1x128xf32, #tpu.memory_space<vmem>>, vector<1x128xf32>
    %1 = vector.shape_cast %0 : vector<1x128xf32> to vector<1x128xf32>
    %2 = vector.broadcast %1 : vector<1x128xf32> to vector<34x128xf32>
    %c0_1 = arith.constant 0 : index
    %c0_2 = arith.constant 0 : index
    %3 = vector.load %arg1[%c0_1, %c0_2] : memref<36x128xf32, #tpu.memory_space<vmem>>, vector<34x128xf32>
    %4 = arith.truncf %3 : vector<34x128xf32> to vector<34x128xbf16>
    %c0_3 = arith.constant 0 : index
    %c0_4 = arith.constant 0 : index
    %c0_5 = arith.constant 0 : index
    %5 = vector.load %arg2[%c0_3, %c0_4, %c0_5] : memref<3x128x128xbf16, #tpu.memory_space<vmem>>, vector<1x128x128xbf16>
    %6 = vector.shape_cast %5 : vector<1x128x128xbf16> to vector<128x128xbf16>
    %cst = arith.constant dense<0.000000e+00> : vector<34x128xf32>
    %7 = tpu.matmul %4, %6, %cst {dimension_numbers = #tpu.dot_dimension_numbers<[1], [0], [0], [1], [0, 0, 1, 1], [], []>} : vector<34x128xbf16>, vector<128x128xbf16>, vector<34x128xf32> -> vector<34x128xf32>
    %8 = arith.addf %2, %7 : vector<34x128xf32>
    %c1 = arith.constant 1 : index
    %c0_6 = arith.constant 0 : index
    %9 = vector.load %arg1[%c1, %c0_6] : memref<36x128xf32, #tpu.memory_space<vmem>>, vector<34x128xf32>
    %10 = arith.truncf %9 : vector<34x128xf32> to vector<34x128xbf16>
    %c1_7 = arith.constant 1 : index
    %c0_8 = arith.constant 0 : index
    %c0_9 = arith.constant 0 : index
    %11 = vector.load %arg2[%c1_7, %c0_8, %c0_9] : memref<3x128x128xbf16, #tpu.memory_space<vmem>>, vector<1x128x128xbf16>
    %12 = vector.shape_cast %11 : vector<1x128x128xbf16> to vector<128x128xbf16>
    %cst_10 = arith.constant dense<0.000000e+00> : vector<34x128xf32>
    %13 = tpu.matmul %10, %12, %cst_10 {dimension_numbers = #tpu.dot_dimension_numbers<[1], [0], [0], [1], [0, 0, 1, 1], [], []>} : vector<34x128xbf16>, vector<128x128xbf16>, vector<34x128xf32> -> vector<34x128xf32>
    %14 = arith.addf %8, %13 : vector<34x128xf32>
    %c2 = arith.constant 2 : index
    %c0_11 = arith.constant 0 : index
    %15 = vector.load %arg1[%c2, %c0_11] : memref<36x128xf32, #tpu.memory_space<vmem>>, vector<34x128xf32>
    %16 = arith.truncf %15 : vector<34x128xf32> to vector<34x128xbf16>
    %c2_12 = arith.constant 2 : index
    %c0_13 = arith.constant 0 : index
    %c0_14 = arith.constant 0 : index
    %17 = vector.load %arg2[%c2_12, %c0_13, %c0_14] : memref<3x128x128xbf16, #tpu.memory_space<vmem>>, vector<1x128x128xbf16>
    %18 = vector.shape_cast %17 : vector<1x128x128xbf16> to vector<128x128xbf16>
    %cst_15 = arith.constant dense<0.000000e+00> : vector<34x128xf32>
    %19 = tpu.matmul %16, %18, %cst_15 {dimension_numbers = #tpu.dot_dimension_numbers<[1], [0], [0], [1], [0, 0, 1, 1], [], []>} : vector<34x128xbf16>, vector<128x128xbf16>, vector<34x128xf32> -> vector<34x128xf32>
    %20 = arith.addf %14, %19 : vector<34x128xf32>
    %cst_16 = arith.constant 0.000000e+00 : f32
    %21 = vector.broadcast %cst_16 : f32 to vector<34x128xf32>
    %22 = arith.cmpf ogt, %20, %21 : vector<34x128xf32>
    %cst_17 = arith.constant 0.00999999977 : f32
    %23 = vector.broadcast %cst_17 : f32 to vector<34x128xf32>
    %24 = arith.mulf %23, %20 : vector<34x128xf32>
    %25 = arith.select %22, %20, %24 : vector<34x128xi1>, vector<34x128xf32>
    %26 = tpu.iota {dimensions = array<i32: 0>} : vector<34x1xi32>
    %c18_i32 = arith.constant 18 : i32
    %c0_i32 = arith.constant 0 : i32
    %27 = arith.cmpi eq, %c18_i32, %c0_i32 : i32
    %c1_i32 = arith.constant 1 : i32
    %28 = arith.select %27, %c1_i32, %c18_i32 : i32
    %29 = vector.broadcast %28 : i32 to vector<34x1xi32>
    %30 = arith.remsi %26, %29 : vector<34x1xi32>
    %c0_i32_18 = arith.constant 0 : i32
    %31 = vector.broadcast %c0_i32_18 : i32 to vector<34x1xi32>
    %32 = arith.cmpi ne, %30, %31 : vector<34x1xi32>
    %c0_i32_19 = arith.constant 0 : i32
    %33 = vector.broadcast %c0_i32_19 : i32 to vector<34x1xi32>
    %34 = arith.cmpi slt, %30, %33 : vector<34x1xi32>
    %c0_i32_20 = arith.constant 0 : i32
    %35 = arith.cmpi slt, %28, %c0_i32_20 : i32
    %36 = vector.broadcast %35 : i1 to vector<34x1xi1>
    %37 = vector.broadcast %36 : vector<34x1xi1> to vector<34x1xi1>
    %38 = arith.xori %34, %37 : vector<34x1xi1>
    %39 = arith.andi %38, %32 : vector<34x1xi1>
    %40 = vector.broadcast %28 : i32 to vector<34x1xi32>
    %41 = arith.addi %30, %40 : vector<34x1xi32>
    %42 = arith.select %39, %41, %30 : vector<34x1xi1>, vector<34x1xi32>
    %c16_i32 = arith.constant 16 : i32
    %43 = vector.broadcast %c16_i32 : i32 to vector<34x1xi32>
    %44 = arith.cmpi slt, %42, %43 : vector<34x1xi32>
    %cst_21 = arith.constant 0.000000e+00 : f32
    %45 = vector.shape_cast %44 : vector<34x1xi1> to vector<34x1xi1>
    %46 = vector.broadcast %45 : vector<34x1xi1> to vector<34x128xi1>
    %47 = vector.broadcast %cst_21 : f32 to vector<34x128xf32>
    %48 = arith.select %46, %25, %47 : vector<34x128xi1>, vector<34x128xf32>
    %cst_22 = arith.constant 0.000000e+00 : f32
    %49 = vector.broadcast %cst_22 : f32 to vector<1x128xf32>
    %c0_23 = arith.constant 0 : index
    %c0_24 = arith.constant 0 : index
    %50 = vector.load %arg7[%c0_23, %c0_24] : memref<36x128xf32, #tpu.memory_space<vmem>>, vector<1x128xf32>
    tpu.vector_store %arg7[%c0_23, %c0_24], %49 {strides = array<i32>} : memref<36x128xf32, #tpu.memory_space<vmem>>, vector<1x128xf32>,
    %c35 = arith.constant 35 : index
    %c0_25 = arith.constant 0 : index
    %51 = vector.load %arg7[%c35, %c0_25] : memref<36x128xf32, #tpu.memory_space<vmem>>, vector<1x128xf32>
    tpu.vector_store %arg7[%c35, %c0_25], %49 {strides = array<i32>} : memref<36x128xf32, #tpu.memory_space<vmem>>, vector<1x128xf32>,
    %c1_26 = arith.constant 1 : index
    %c0_27 = arith.constant 0 : index
    %52 = vector.load %arg7[%c1_26, %c0_27] : memref<36x128xf32, #tpu.memory_space<vmem>>, vector<34x128xf32>
    tpu.vector_store %arg7[%c1_26, %c0_27], %48 {strides = array<i32>} : memref<36x128xf32, #tpu.memory_space<vmem>>, vector<34x128xf32>,
    %c0_28 = arith.constant 0 : index
    %c0_29 = arith.constant 0 : index
    %53 = vector.load %arg5[%c0_28, %c0_29] : memref<1x128xf32, #tpu.memory_space<vmem>>, vector<1x128xf32>
    %54 = vector.shape_cast %53 : vector<1x128xf32> to vector<1x128xf32>
    %55 = vector.broadcast %54 : vector<1x128xf32> to vector<34x128xf32>
    %c0_30 = arith.constant 0 : index
    %c0_31 = arith.constant 0 : index
    %56 = vector.load %arg7[%c0_30, %c0_31] : memref<36x128xf32, #tpu.memory_space<vmem>>, vector<34x128xf32>
    %57 = arith.truncf %56 : vector<34x128xf32> to vector<34x128xbf16>
    %c0_32 = arith.constant 0 : index
    %c0_33 = arith.constant 0 : index
    %c0_34 = arith.constant 0 : index
    %58 = vector.load %arg4[%c0_32, %c0_33, %c0_34] : memref<3x128x128xbf16, #tpu.memory_space<vmem>>, vector<1x128x128xbf16>
    %59 = vector.shape_cast %58 : vector<1x128x128xbf16> to vector<128x128xbf16>
    %cst_35 = arith.constant dense<0.000000e+00> : vector<34x128xf32>
    %60 = tpu.matmul %57, %59, %cst_35 {dimension_numbers = #tpu.dot_dimension_numbers<[1], [0], [0], [1], [0, 0, 1, 1], [], []>} : vector<34x128xbf16>, vector<128x128xbf16>, vector<34x128xf32> -> vector<34x128xf32>
    %61 = arith.addf %55, %60 : vector<34x128xf32>
    %c1_36 = arith.constant 1 : index
    %c0_37 = arith.constant 0 : index
    %62 = vector.load %arg7[%c1_36, %c0_37] : memref<36x128xf32, #tpu.memory_space<vmem>>, vector<34x128xf32>
    %63 = arith.truncf %62 : vector<34x128xf32> to vector<34x128xbf16>
    %c1_38 = arith.constant 1 : index
    %c0_39 = arith.constant 0 : index
    %c0_40 = arith.constant 0 : index
    %64 = vector.load %arg4[%c1_38, %c0_39, %c0_40] : memref<3x128x128xbf16, #tpu.memory_space<vmem>>, vector<1x128x128xbf16>
    %65 = vector.shape_cast %64 : vector<1x128x128xbf16> to vector<128x128xbf16>
    %cst_41 = arith.constant dense<0.000000e+00> : vector<34x128xf32>
    %66 = tpu.matmul %63, %65, %cst_41 {dimension_numbers = #tpu.dot_dimension_numbers<[1], [0], [0], [1], [0, 0, 1, 1], [], []>} : vector<34x128xbf16>, vector<128x128xbf16>, vector<34x128xf32> -> vector<34x128xf32>
    %67 = arith.addf %61, %66 : vector<34x128xf32>
    %c2_42 = arith.constant 2 : index
    %c0_43 = arith.constant 0 : index
    %68 = vector.load %arg7[%c2_42, %c0_43] : memref<36x128xf32, #tpu.memory_space<vmem>>, vector<34x128xf32>
    %69 = arith.truncf %68 : vector<34x128xf32> to vector<34x128xbf16>
    %c2_44 = arith.constant 2 : index
    %c0_45 = arith.constant 0 : index
    %c0_46 = arith.constant 0 : index
    %70 = vector.load %arg4[%c2_44, %c0_45, %c0_46] : memref<3x128x128xbf16, #tpu.memory_space<vmem>>, vector<1x128x128xbf16>
    %71 = vector.shape_cast %70 : vector<1x128x128xbf16> to vector<128x128xbf16>
    %cst_47 = arith.constant dense<0.000000e+00> : vector<34x128xf32>
    %72 = tpu.matmul %69, %71, %cst_47 {dimension_numbers = #tpu.dot_dimension_numbers<[1], [0], [0], [1], [0, 0, 1, 1], [], []>} : vector<34x128xbf16>, vector<128x128xbf16>, vector<34x128xf32> -> vector<34x128xf32>
    %73 = arith.addf %67, %72 : vector<34x128xf32>
    %cst_48 = arith.constant 0.000000e+00 : f32
    %74 = vector.broadcast %cst_48 : f32 to vector<34x128xf32>
    %75 = arith.cmpf ogt, %73, %74 : vector<34x128xf32>
    %cst_49 = arith.constant 0.00999999977 : f32
    %76 = vector.broadcast %cst_49 : f32 to vector<34x128xf32>
    %77 = arith.mulf %76, %73 : vector<34x128xf32>
    %78 = arith.select %75, %73, %77 : vector<34x128xi1>, vector<34x128xf32>
    %79 = vector.extract_strided_slice %78 {offsets = [0, 0], sizes = [16, 128], strides = [1, 1]} : vector<34x128xf32> to vector<16x128xf32>
    %c0_50 = arith.constant 0 : index
    %c0_51 = arith.constant 0 : index
    %80 = vector.load %arg6[%c0_50, %c0_51] : memref<32x128xf32, #tpu.memory_space<vmem>>, vector<16x128xf32>
    tpu.vector_store %arg6[%c0_50, %c0_51], %79 {strides = array<i32>} : memref<32x128xf32, #tpu.memory_space<vmem>>, vector<16x128xf32>,
    %81 = vector.extract_strided_slice %78 {offsets = [18, 0], sizes = [16, 128], strides = [1, 1]} : vector<34x128xf32> to vector<16x128xf32>
    %c16 = arith.constant 16 : index
    %c0_52 = arith.constant 0 : index
    %82 = vector.load %arg6[%c16, %c0_52] : memref<32x128xf32, #tpu.memory_space<vmem>>, vector<16x128xf32>
    tpu.vector_store %arg6[%c16, %c0_52], %81 {strides = array<i32>} : memref<32x128xf32, #tpu.memory_space<vmem>>, vector<16x128xf32>,
    return
  }
  func.func @transform_0(%arg0: i32) -> (i32, i32) {
    %c0_i32 = arith.constant 0 : i32
    %c0_i32_0 = arith.constant 0 : i32
    return %arg0, %c0_i32 : i32, i32
  }
  func.func @transform_1(%arg0: i32) -> (i32, i32, i32) {
    %c0_i32 = arith.constant 0 : i32
    %c0_i32_0 = arith.constant 0 : i32
    %c0_i32_1 = arith.constant 0 : i32
    %c0_i32_2 = arith.constant 0 : i32
    return %c0_i32, %c0_i32_0, %c0_i32_1 : i32, i32, i32
  }
  func.func @transform_2(%arg0: i32) -> (i32, i32) {
    %c0_i32 = arith.constant 0 : i32
    %c0_i32_0 = arith.constant 0 : i32
    %c0_i32_1 = arith.constant 0 : i32
    return %c0_i32, %c0_i32_0 : i32, i32
  }
  func.func @transform_3(%arg0: i32) -> (i32, i32, i32) {
    %c0_i32 = arith.constant 0 : i32
    %c0_i32_0 = arith.constant 0 : i32
    %c0_i32_1 = arith.constant 0 : i32
    %c0_i32_2 = arith.constant 0 : i32
    return %c0_i32, %c0_i32_0, %c0_i32_1 : i32, i32, i32
  }
  func.func @transform_4(%arg0: i32) -> (i32, i32) {
    %c0_i32 = arith.constant 0 : i32
    %c0_i32_0 = arith.constant 0 : i32
    %c0_i32_1 = arith.constant 0 : i32
    return %c0_i32, %c0_i32_0 : i32, i32
  }
  func.func @transform_5(%arg0: i32) -> (i32, i32) {
    %c0_i32 = arith.constant 0 : i32
    %c0_i32_0 = arith.constant 0 : i32
    return %arg0, %c0_i32 : i32, i32
  }
}

</mosaic_0001>

<bundles_post_ra>
// kernel: tile.13
= control target key start
LH: loop header
LB: loop body
LE: loop exit
PB: predicated region body
PF: predicated region fallthrough
CT: control target
= control target key end

     0   :  { %s28_s0 = inlined_call_operand.vmem [shape: f32[8], index: 0, kind: input, shape index: {}]   ;;  %s29_s1 = inlined_call_operand.vmem [shape: f32[16,8], index: 1, kind: output, shape index: {}]  }
   0x1   :  { %v4_v0 = vld [vmem:[%s28_s0] ss:$0 sm:$0xff] }
   0x2   :  { %5 = vst [vmem:[%s29_s1] sm:$0xff] %v4_v0 }
   0x3   :  { %8 = vst [vmem:[%s29_s1 + $0x8] sm:$0xff] %v4_v0 }

// kernel: double_conv_forward.1
= control target key start
LH: loop header
LB: loop body
LE: loop exit
PB: predicated region body
PF: predicated region fallthrough
CT: control target
= control target key end

     0   :  { %v341_v48 = vlaneseq  ;;  %s1598_s1 = inlined_call_operand.vmem [shape: bf16[3,128,128], index: 1, kind: input, shape index: {}]   ;;  %s1599_s2 = inlined_call_operand.vmem [shape: f32[1,128], index: 2, kind: input, shape index: {}]   ;;  %s1600_s0 = inlined_call_operand.vmem [shape: f32[36,128], index: 0, kind: input, shape index: {}]   ;;  %s1601_s3 = inlined_call_operand.vmem [shape: bf16[3,128,128], index: 3, kind: input, shape index: {}]   ;;  %s1602_s4 = inlined_call_operand.vmem [shape: f32[1,128], index: 4, kind: input, shape index: {}]   ;;  %s1603_s5 = inlined_call_operand.vmem [shape: f32[32,128], index: 5, kind: output, shape index: {}]  }
   0x1   :  { %v1137_v0 = vld [vmem:[%s1598_s1 + $0x38] sm:$0xff]  ;;  %v1136_v2 = vld [vmem:[%s1598_s1 + $0x30] sm:$0xff]  ;;  %v1135_v4 = vld [vmem:[%s1598_s1 + $0x28] sm:$0xff] }
   0x2   :  { %v1145_v1 = vld [vmem:[%s1598_s1 + $0x78] sm:$0xff]  ;;  %1178 = vmatpush.bf16.msra.mxu2 %v1137_v0  ;;  %96 = vmatpush.bf16.msra.mxu0 %v1137_v0  ;;  %v1144_v3 = vld [vmem:[%s1598_s1 + $0x70] sm:$0xff]  ;;  %v1143_v5 = vld [vmem:[%s1598_s1 + $0x68] sm:$0xff]  ;;  %v1353_v49 = vshrl.u32 %v341_v48, 7 }
   0x3   :  { %1186 = vmatpush.bf16.msra.mxu3 %v1145_v1  ;;  %197 = vmatpush.bf16.msra.mxu1 %v1145_v1  ;;  %v1134_v6 = vld [vmem:[%s1598_s1 + $0x20] sm:$0xff]  ;;  %v1133_v8 = vld [vmem:[%s1598_s1 + $0x18] sm:$0xff]  ;;  %v1132_v10 = vld [vmem:[%s1598_s1 + $0x10] sm:$0xff] }
   0x4   :  { %v1142_v7 = vld [vmem:[%s1598_s1 + $0x60] sm:$0xff]  ;;  %v1141_v9 = vld [vmem:[%s1598_s1 + $0x58] sm:$0xff]  ;;  %v1140_v11 = vld [vmem:[%s1598_s1 + $0x50] sm:$0xff]  ;;  %v350_v52 = vand.u32 65535, %v1353_v49  ;;  %v351_v55 = vshrl.u32 %v1353_v49, 16  ;;  %v1370_v60 = vadd.s32 8, %v1353_v49 }
   0x5   :  { %v1131_v12 = vld [vmem:[%s1598_s1 + $0x8] sm:$0xff]  ;;  %v1130_v14 = vld [vmem:[%s1598_s1] sm:$0xff]  ;;  %v1153_v18 = vld [vmem:[%s1598_s1 + $0xb8] sm:$0xff] }
   0x6   :  { %1179 = vmatpush.bf16.msra.mxu2 %v1136_v2  ;;  %97 = vmatpush.bf16.msra.mxu0 %v1136_v2  ;;  %v1139_v13 = vld [vmem:[%s1598_s1 + $0x48] sm:$0xff]  ;;  %v28_v15 = vld [vmem:[%s1600_s0 + $0x20] sm:$0x3]  ;;  %v1152_v26 = vld [vmem:[%s1598_s1 + $0xb0] sm:$0xff]  ;;  %v354_v56 = vmul.u32 58254, %v350_v52  ;;  %v353_v57 = vmul.u32 14564, %v350_v52 }
   0x7   :  { %1187 = vmatpush.bf16.msra.mxu3 %v1144_v3  ;;  %198 = vmatpush.bf16.msra.mxu1 %v1144_v3  ;;  %v24_v16 = vld [vmem:[%s1600_s0] sm:$0xff]  ;;  %v25_v17 = vld [vmem:[%s1600_s0 + $0x8] sm:$0xff]  ;;  %v31_v23 = vpack.c.bf16 %v28_v15, %v28_v15  ;;  %v26_v30 = vld [vmem:[%s1600_s0 + $0x10] sm:$0xff]  ;;  %v355_v58 = vmul.u32 14564, %v351_v55  ;;  %v379_v63 = vand.u32 65535, %v1370_v60  ;;  %v356_v0 = vmul.u32 58254, %v351_v55 }
   0x8   :  { %v1138_v19 = vld [vmem:[%s1598_s1 + $0x40] sm:$0xff]  ;;  %v125_v22 = vld [vmem:[%s1600_s0 + $0x9] sm:$0xff]  ;;  %v29_v24 = vpack.c.bf16 %v25_v17, %v24_v16  ;;  %v27_v31 = vld [vmem:[%s1600_s0 + $0x18] sm:$0xff]  ;;  %v357_v59 = vshll.u32 %v354_v56, 16  ;;  %v380_v1 = vshrl.u32 %v1370_v60, 16  ;;  %v1204_v2 = vmov 0  }
   0x9   :  { %v128_v20 = vld [vmem:[%s1600_s0 + $0x21] sm:$0x3]  ;;  %v1151_v28 = vld [vmem:[%s1598_s1 + $0xa8] sm:$0xff]  ;;  %v1149_v32 = vld [vmem:[%s1598_s1 + $0x98] sm:$0xff]  ;;  %v30_v35 = vpack.c.bf16 %v27_v31, %v26_v30  ;;  %v359_v61 = vshll.u32 %v355_v58, 16  ;;  %v1442_v52 = vadd.s32 32, %v1353_v49 }
   0xa   :  { %1180 = vmatpush.bf16.msra.mxu2 %v1135_v4  ;;  %98 = vmatpush.bf16.msra.mxu0 %v1135_v4  ;;  %v124_v21 = vld [vmem:[%s1600_s0 + $0x1] sm:$0xff]  ;;  %v131_v25 = vpack.c.bf16 %v128_v20, %v128_v20  ;;  %v126_v33 = vld [vmem:[%s1600_s0 + $0x11] sm:$0xff]  ;;  %v127_v34 = vld [vmem:[%s1600_s0 + $0x19] sm:$0xff]  ;;  %vm361_vm0 = vc.u32 %v353_v57, %v357_v59  ;;  %v363_v62 = vadd.s32 %v357_v59, %v353_v57  ;;  %v1375_v4 = vmul.u32 58254, %v379_v63 }
   0xb   :  { %1188 = vmatpush.bf16.msra.mxu3 %v1143_v5  ;;  %199 = vmatpush.bf16.msra.mxu1 %v1143_v5  ;;  %v129_v27 = vpack.c.bf16 %v125_v22, %v124_v21  ;;  %v1150_v29 = vld [vmem:[%s1598_s1 + $0xa0] sm:$0xff]  ;;  %v1148_v36 = vld [vmem:[%s1598_s1 + $0x90] sm:$0xff]  ;;  %v130_v37 = vpack.c.bf16 %v127_v34, %v126_v33  ;;  %v1147_v38 = vld [vmem:[%s1598_s1 + $0x88] sm:$0xff]  ;;  %v362_v3 = vsel %vm361_vm0, 1, %v1204_v2  ;;  %v1205_v57 = vmov 0.0  }
   0xc   :  { %v1146_v39 = vld [vmem:[%s1598_s1 + $0x80] sm:$0xff]  ;;  %v226_v41 = vld [vmem:[%s1600_s0 + $0xa] sm:$0xff]  ;;  %v227_v43 = vld [vmem:[%s1600_s0 + $0x12] sm:$0xff]  ;;  %vm365_vm1 = vc.u32 %v363_v62, %v359_v61  ;;  %537 = vst [vmem:[#allocation2] sm:$0x1] %v1205_v57 }
   0xd   :  { %v225_v40 = vld [vmem:[%s1600_s0 + $0x2] sm:$0xff]  ;;  %v228_v44 = vld [vmem:[%s1600_s0 + $0x1a] sm:$0xff]  ;;  %v1160_v53 = vld [vmem:[%s1601_s3 + $0x30] sm:$0xff]  ;;  %538 = vst [vmem:[#allocation2 + $0x23] sm:$0x1] %v1205_v57 }
   0xe   :  { %1181 = vmatpush.bf16.msra.mxu2 %v1134_v6  ;;  %99 = vmatpush.bf16.msra.mxu0 %v1134_v6  ;;  %v230_v42 = vpack.c.bf16 %v226_v41, %v225_v40  ;;  %v231_v45 = vpack.c.bf16 %v228_v44, %v227_v43  ;;  %v229_v46 = vld [vmem:[%s1600_s0 + $0x22] sm:$0x3]  ;;  %v1161_v50 = vld [vmem:[%s1601_s3 + $0x38] sm:$0xff]  ;;  %v1168_v54 = vld [vmem:[%s1601_s3 + $0x70] sm:$0xff]  ;;  %v364_v6 = vadd.s32 %v362_v3, %v356_v0 }
   0xf   :  { %1189 = vmatpush.bf16.msra.mxu3 %v1142_v7  ;;  %200 = vmatpush.bf16.msra.mxu1 %v1142_v7  ;;  %v232_v47 = vpack.c.bf16 %v229_v46, %v229_v46  ;;  %v1169_v51 = vld [vmem:[%s1601_s3 + $0x78] sm:$0xff]  ;;  %v1167_v5 = vld [vmem:[%s1601_s3 + $0x68] sm:$0xff]  ;;  %v1380_v7 = vmul.u32 14564, %v380_v1  ;;  %v1176_v33 = vld [vmem:[%s1601_s3 + $0xb0] sm:$0xff]  ;;  %v387_v46 = vshrl.u32 %v1375_v4, 16 }
  0x10   :  { %v1177_v20 = vld [vmem:[%s1601_s3 + $0xb8] sm:$0xff]  ;;  %v1159_v21 = vld [vmem:[%s1601_s3 + $0x28] sm:$0xff]  ;;  %v1158_v34 = vld [vmem:[%s1601_s3 + $0x20] sm:$0xff] }
  0x11   :  { %v388_v16 = vshll.u32 %v1380_v7, 16  ;;  %v1165_v22 = vld [vmem:[%s1601_s3 + $0x58] sm:$0xff]  ;;  %v1163_v44 = vld [vmem:[%s1601_s3 + $0x48] sm:$0xff]  ;;  %v1156_v59 = vld [vmem:[%s1601_s3 + $0x10] sm:$0xff]  ;;  %v389_v0 = vshrl.u32 %v1380_v7, 16 }
  0x12   :  { %1182 = vmatpush.bf16.msra.mxu2 %v1133_v8  ;;  %100 = vmatpush.bf16.msra.mxu0 %v1133_v8  ;;  %v1383_v8 = vadd.s32 16, %v1353_v49  ;;  %v1157_v43 = vld [vmem:[%s1601_s3 + $0x18] sm:$0xff] }
  0x13   :  { %1190 = vmatpush.bf16.msra.mxu3 %v1141_v9  ;;  %201 = vmatpush.bf16.msra.mxu1 %v1141_v9  ;;  %v366_v9 = vsel %vm365_vm1, 1, %v1204_v2  ;;  %v1173_v7 = vld [vmem:[%s1601_s3 + $0x98] sm:$0xff] }
  0x14   :  { %v368_v15 = vadd.s32 %v366_v9, %v364_v6 }
  0x16   :  { %1183 = vmatpush.bf16.msra.mxu2 %v1132_v10  ;;  %101 = vmatpush.bf16.msra.mxu0 %v1132_v10  ;;  %v382_v10 = vmul.u32 14564, %v379_v63 }
  0x17   :  { %1191 = vmatpush.bf16.msra.mxu3 %v1140_v11  ;;  %202 = vmatpush.bf16.msra.mxu1 %v1140_v11  ;;  %v386_v11 = vshll.u32 %v1375_v4, 16  ;;  %v1162_v4 = vld [vmem:[%s1601_s3 + $0x40] sm:$0xff] }
  0x19   :  { %vm390_vm2 = vc.u32 %v382_v10, %v386_v11  ;;  %v392_v17 = vadd.s32 %v386_v11, %v382_v10  ;;  %v1155_v10 = vld [vmem:[%s1601_s3 + $0x8] sm:$0xff] }
  0x1a   :  { %1184 = vmatpush.bf16.msra.mxu2 %v1131_v12  ;;  %102 = vmatpush.bf16.msra.mxu0 %v1131_v12  ;;  %v1166_v12 = vld [vmem:[%s1601_s3 + $0x60] sm:$0xff] }
  0x1b   :  { %1192 = vmatpush.bf16.msra.mxu3 %v1139_v13  ;;  %203 = vmatpush.bf16.msra.mxu1 %v1139_v13  ;;  %v408_v13 = vand.u32 65535, %v1383_v8  ;;  %vm394_vm3 = vc.u32 %v392_v17, %v388_v16 }
  0x1e   :  { %1185 = vmatpush.bf16.msra.mxu2 %v1130_v14  ;;  %103 = vmatpush.bf16.msra.mxu0 %v1130_v14  ;;  %v358_v14 = vshrl.u32 %v354_v56, 16 }
  0x1f   :  { %1193 = vmatpush.bf16.msra.mxu3 %v1138_v19  ;;  %204 = vmatpush.bf16.msra.mxu1 %v1138_v19  ;;  %v1393_v19 = vmul.u32 58254, %v408_v13 }
  0x21   :  { %114 = vmatmul.bf16.vlgmr.msra.gmra.mxu2 %v31_v23  ;;  %104 = vmatmul.bf16.vlgmr.msra.gmra.mxu0 %v29_v24  ;;  %v385_v23 = vmul.u32 58254, %v380_v1  ;;  %v360_v24 = vshrl.u32 %v355_v58, 16  ;;  %v415_v31 = vshll.u32 %v1393_v19, 16  ;;  %v1174_v58 = vld [vmem:[%s1601_s3 + $0xa0] sm:$0xff] }
  0x22   :  { %298 = vmatpush.bf16.msrb.mxu2 %v1153_v18  ;;  %215 = vmatmul.bf16.vlgmr.msra.gmra.mxu3 %v131_v25  ;;  %v409_v18 = vshrl.u32 %v1383_v8, 16  ;;  %v369_v25 = vadd.s32 %v368_v15, %v358_v14  ;;  %v416_v15 = vshrl.u32 %v1393_v19, 16 }
  0x23   :  { %205 = vmatmul.bf16.vlgmr.msra.gmra.mxu1 %v129_v27  ;;  %620 = vmatpush.bf16.msrb.mxu3 %v1161_v50  ;;  %v1406_v27 = vadd.s32 24, %v1353_v49 }
  0x24   :  { %721 = vmatpush.bf16.msrb.mxu0 %v1169_v51  ;;  %822 = vmatpush.bf16.msrb.mxu1 %v1177_v20  ;;  %v1410_v30 = vmul.u32 14564, %v409_v18  ;;  %v414_v48 = vmul.u32 58254, %v409_v18 }
  0x26   :  { %299 = vmatpush.bf16.msrb.mxu2 %v1152_v26  ;;  %v391_v26 = vsel %vm390_vm2, 1, %v1204_v2  ;;  %v417_v40 = vshll.u32 %v1410_v30, 16 }
  0x27   :  { %621 = vmatpush.bf16.msrb.mxu3 %v1160_v53 }
  0x28   :  { %722 = vmatpush.bf16.msrb.mxu0 %v1168_v54  ;;  %823 = vmatpush.bf16.msrb.mxu1 %v1176_v33 }
  0x2a   :  { %300 = vmatpush.bf16.msrb.mxu2 %v1151_v28 }
  0x2b   :  { %622 = vmatpush.bf16.msrb.mxu3 %v1159_v21 }
  0x2c   :  { %723 = vmatpush.bf16.msrb.mxu0 %v1167_v5  ;;  %v466_v5 = vand.u32 65535, %v1442_v52 }
  0x2e   :  { %301 = vmatpush.bf16.msrb.mxu2 %v1150_v29  ;;  %v411_v29 = vmul.u32 14564, %v408_v13  ;;  %v467_v13 = vshrl.u32 %v1442_v52, 16  ;;  %v1474_v17 = vmul.u32 58254, %v466_v5 }
  0x2f   :  { %623 = vmatpush.bf16.msrb.mxu3 %v1158_v34 }
  0x30   :  { %724 = vmatpush.bf16.msrb.mxu0 %v1166_v12  ;;  %vm419_vm4 = vc.u32 %v411_v29, %v415_v31  ;;  %v421_v41 = vadd.s32 %v415_v31, %v411_v29  ;;  %v1483_v19 = vmul.u32 14564, %v467_v13  ;;  %v418_v31 = vshrl.u32 %v1410_v30, 16 }
  0x31   :  { %109 = vmatmul.bf16.gmra.mxu0 %v30_v35  ;;  %v393_v35 = vadd.s32 %v391_v26, %v385_v23  ;;  %v420_v51 = vsel %vm419_vm4, 1, %v1204_v2  ;;  %v1154_v23 = vld [vmem:[%s1601_s3] sm:$0xff] }
  0x32   :  { %302 = vmatpush.bf16.msrb.mxu2 %v1149_v32  ;;  %vm1444_vm5 = vc.u32 %v421_v41, %v417_v40  ;;  %v422_v3 = vadd.s32 %v420_v51, %v414_v48  ;;  %v1170_v48 = vld [vmem:[%s1601_s3 + $0x80] sm:$0xff] }
  0x33   :  { %210 = vmatmul.bf16.gmra.mxu1 %v130_v37  ;;  %v437_v37 = vand.u32 65535, %v1406_v27  ;;  %624 = vmatpush.bf16.msrb.mxu3 %v1157_v43  ;;  %v424_v6 = vsel %vm1444_vm5, 1, %v1204_v2 }
  0x34   :  { %725 = vmatpush.bf16.msrb.mxu0 %v1165_v22  ;;  %v426_v16 = vadd.s32 %v424_v6, %v422_v3  ;;  %v1172_v22 = vld [vmem:[%s1601_s3 + $0x90] sm:$0xff] }
  0x35   :  { %v1438_v50 = vmul.u32 58254, %v437_v37  ;;  %v440_v56 = vmul.u32 14564, %v437_v37 }
  0x36   :  { %303 = vmatpush.bf16.msrb.mxu2 %v1148_v36  ;;  %v1164_v36 = vld [vmem:[%s1601_s3 + $0x50] sm:$0xff]  ;;  %v427_v33 = vadd.s32 %v426_v16, %v416_v15 }
  0x37   :  { %v444_v62 = vshll.u32 %v1438_v50, 16  ;;  %625 = vmatpush.bf16.msrb.mxu3 %v1156_v59 }
  0x38   :  { %726 = vmatpush.bf16.msrb.mxu0 %v1164_v36  ;;  %v1491_v36 = vld [vmem:[%s1599_s2] ss:$0 sm:$0xff]  ;;  %v428_v41 = vadd.s32 %v427_v33, %v418_v31 }
  0x39   :  { %vm448_vm6 = vc.u32 %v440_v56, %v444_v62  ;;  %v450_v12 = vadd.s32 %v444_v62, %v440_v56 }
  0x3a   :  { %304 = vmatpush.bf16.msrb.mxu2 %v1147_v38  ;;  %v395_v38 = vsel %vm394_vm3, 1, %v1204_v2  ;;  %v449_v21 = vsel %vm448_vm6, 1, %v1204_v2 }
  0x3b   :  { %626 = vmatpush.bf16.msrb.mxu3 %v1155_v10 }
  0x3c   :  { %727 = vmatpush.bf16.msrb.mxu0 %v1163_v44  ;;  %v472_v44 = vmul.u32 58254, %v467_v13 }
  0x3e   :  { %305 = vmatpush.bf16.msrb.mxu2 %v1146_v39  ;;  %v370_v39 = vadd.s32 %v369_v25, %v360_v24  ;;  %v469_v24 = vmul.u32 14564, %v466_v5  ;;  %v473_v25 = vshll.u32 %v1474_v17, 16 }
  0x3f   :  { %627 = vmatpush.bf16.msrb.mxu3 %v1154_v23 }
  0x40   :  { %v371_v54 = vshrl.u32 %v370_v39, 4  ;;  %728 = vmatpush.bf16.msrb.mxu0 %v1162_v4  ;;  %vm477_vm8 = vc.u32 %v469_v24, %v473_v25  ;;  %v479_v30 = vadd.s32 %v473_v25, %v469_v24 }
  0x41   :  { %306 = vmatmul.bf16.vlgmr.msrb.gmra.mxu2 %v230_v42  ;;  %v1175_v42 = vld [vmem:[%s1601_s3 + $0xa8] sm:$0xff] }
  0x42   :  { %824 = vmatpush.bf16.msrb.mxu1 %v1175_v42  ;;  %v372_v9 = vmul.u32 18, %v371_v54  ;;  %v445_v42 = vshrl.u32 %v1438_v50, 16  ;;  %v429_v50 = vshrl.u32 %v428_v41, 4 }
  0x44   :  { %v373_v26 = vsub.s32 %v1353_v49, %v372_v9  ;;  %v475_v49 = vshll.u32 %v1483_v19, 16 }
  0x46   :  { %825 = vmatpush.bf16.msrb.mxu1 %v1174_v58  ;;  %vm492_vm9 = vcmp.ne.s32.totalorder %v373_v26, 0  ;;  %vm497_vm10 = vcmp.lt.s32.totalorder %v373_v26, 0  ;;  %vm481_vm11 = vc.u32 %v479_v30, %v475_v49 }
  0x47   :  { %vm1504_vm12 = vmand %vm497_vm10, %vm492_vm9  ;;  %v482_v58 = vsel %vm481_vm11, 1, %v1204_v2 }
  0x4a   :  { %826 = vmatpush.bf16.msrb.mxu1 %v1173_v7 }
  0x4e   :  { %827 = vmatpush.bf16.msrb.mxu1 %v1172_v22 }
  0x51   :  { %311 = vmatmul.bf16.gmra.mxu2 %v231_v45  ;;  %v438_v45 = vshrl.u32 %v1406_v27, 16 }
  0x53   :  { %v1454_v61 = vmul.u32 14564, %v438_v45  ;;  %v443_v20 = vmul.u32 58254, %v438_v45  ;;  %v478_v45 = vsel %vm477_vm8, 1, %v1204_v2 }
  0x54   :  { %v480_v57 = vadd.s32 %v478_v45, %v472_v44 }
  0x55   :  { %v446_v11 = vshll.u32 %v1454_v61, 16  ;;  %v447_v55 = vshrl.u32 %v1454_v61, 16 }
  0x56   :  { %v484_v4 = vadd.s32 %v482_v58, %v480_v57 }
  0x57   :  { %vm452_vm7 = vc.u32 %v450_v12, %v446_v11 }
  0x58   :  { %v453_v37 = vsel %vm452_vm7, 1, %v1204_v2 }
  0x61   :  { %316 = vmatmul.bf16.gmra.mxu2 %v232_v47  ;;  %v397_v47 = vadd.s32 %v395_v38, %v393_v35  ;;  %v451_v35 = vadd.s32 %v449_v21, %v443_v20  ;;  %v1171_v38 = vld [vmem:[%s1601_s3 + $0x88] sm:$0xff] }
  0x62   :  { %828 = vmatpush.bf16.msrb.mxu1 %v1171_v38 }
  0x63   :  { %v398_v1 = vadd.s32 %v397_v47, %v387_v46  ;;  %v455_v43 = vadd.s32 %v453_v37, %v451_v35  ;;  %v507_v47 = vadd.s32 18, %v373_v26 }
  0x65   :  { %v399_v14 = vadd.s32 %v398_v1, %v389_v0  ;;  %v456_v56 = vadd.s32 %v455_v43, %v445_v42  ;;  %v430_v1 = vmul.u32 18, %v429_v50 }
  0x66   :  { %829 = vmatpush.bf16.msrb.mxu1 %v1170_v48 }
  0x67   :  { %v400_v29 = vshrl.u32 %v399_v14, 4  ;;  %v457_v3 = vadd.s32 %v456_v56, %v447_v55  ;;  %v431_v10 = vsub.s32 %v1383_v8, %v430_v1  ;;  %v476_v14 = vshrl.u32 %v1483_v19, 16 }
  0x69   :  { %v401_v40 = vmul.u32 18, %v400_v29  ;;  %v458_v13 = vshrl.u32 %v457_v3, 4  ;;  %vm494_vm2 = vcmp.ne.s32.totalorder %v431_v10, 0  ;;  %vm499_vm3 = vcmp.lt.s32.totalorder %v431_v10, 0 }
  0x6a   :  { %v509_v19 = vadd.s32 18, %v431_v10  ;;  %vm1534_vm6 = vmand %vm499_vm3, %vm494_vm2 }
  0x6b   :  { %v402_v54 = vsub.s32 %v1370_v60, %v401_v40  ;;  %v474_v60 = vshrl.u32 %v1474_v17, 16  ;;  %v459_v8 = vmul.u32 18, %v458_v13 }
  0x6c   :  { %v514_v49 = vsel %vm1534_vm6, %v509_v19, %v431_v10 }
  0x6d   :  { %vm493_vm13 = vcmp.ne.s32.totalorder %v402_v54, 0  ;;  %vm498_vm14 = vcmp.lt.s32.totalorder %v402_v54, 0  ;;  %v508_v2 = vadd.s32 18, %v402_v54  ;;  %v485_v15 = vadd.s32 %v484_v4, %v474_v60 }
  0x6e   :  { %vm1519_vm1 = vmand %vm498_vm14, %vm493_vm13  ;;  %vm1548_vm11 = vcmp.lt.s32.totalorder %v514_v49, 16 }
  0x6f   :  { %v486_v23 = vadd.s32 %v485_v15, %v476_v14 }
  0x71   :  { %v487_v35 = vshrl.u32 %v486_v23, 4 }
  0x73   :  { %v488_v40 = vmul.u32 18, %v487_v35 }
  0x9e   :  { %v105_v18 = vpop.f32.mrf.mxu0 }
  0x9f   :  { %v119_v39 = vadd.f32 %v1491_v36, %v105_v18  ;;  %v513_v18 = vsel %vm1519_vm1, %v508_v2, %v402_v54 }
  0xa0   :  { %v206_v34 = vpop.f32.mrf.mxu1  ;;  %vm1530_vm5 = vcmp.lt.s32.totalorder %v513_v18, 16 }
  0xa1   :  { %v220_v51 = vadd.f32 %v206_v34, %v119_v39  ;;  %v460_v34 = vsub.s32 %v1406_v27, %v459_v8 }
  0xa3   :  { %vm495_vm8 = vcmp.ne.s32.totalorder %v460_v34, 0  ;;  %vm500_vm9 = vcmp.lt.s32.totalorder %v460_v34, 0  ;;  %v510_v44 = vadd.s32 18, %v460_v34 }
  0xa4   :  { %v1408_v28 = vpop.f32.mrf.mxu2 }
  0xa5   :  { %v1413_v32 = vpop.f32.mrf.mxu3  ;;  %v123_v58 = vadd.f32 %v1491_v36, %v1408_v28 }
  0xa6   :  { %v107_v46 = vpop.f32.mrf.mxu0 }
  0xa7   :  { %v120_v61 = vadd.f32 %v1491_v36, %v107_v46  ;;  %v224_v4 = vadd.f32 %v1413_v32, %v123_v58 }
  0xa8   :  { %v208_v59 = vpop.f32.mrf.mxu1 }
  0xa9   :  { %v221_v16 = vadd.f32 %v208_v59, %v120_v61 }
  0xac   :  { %v117_v53 = vpop.f32.mrf.mxu2 }
  0xad   :  { %v218_v63 = vpop.f32.mrf.mxu3  ;;  %v489_v53 = vsub.s32 %v1442_v52, %v488_v40 }
  0xae   :  { %v512_v63 = vsel %vm1504_vm12, %v507_v47, %v373_v26  ;;  %v110_v12 = vpop.f32.mrf.mxu0  ;;  %vm1552_vm12 = vmand %vm500_vm9, %vm495_vm8 }
  0xaf   :  { %vm1515_vm0 = vcmp.lt.s32.totalorder %v512_v63, 16  ;;  %v121_v20 = vadd.f32 %v1491_v36, %v110_v12  ;;  %v515_v56 = vsel %vm1552_vm12, %v510_v44, %v460_v34  ;;  %vm496_vm13 = vcmp.ne.s32.totalorder %v489_v53, 0 }
  0xb0   :  { %v211_v22 = vpop.f32.mrf.mxu1  ;;  %vm1198_vm7 = vmpackc.low %vm1530_vm5, %vm1515_vm0  ;;  %vm501_vm14 = vcmp.lt.s32.totalorder %v489_v53, 0  ;;  %v511_v52 = vadd.s32 18, %v489_v53 }
  0xb1   :  { %v222_v26 = vadd.f32 %v211_v22, %v121_v20  ;;  %vm1567_vm1 = vmand %vm501_vm14, %vm496_vm13 }
  0xb2   :  { %v516_v61 = vsel %vm1567_vm1, %v511_v52, %v489_v53 }
  0xb6   :  { %v112_v37 = vpop.f32.mrf.mxu0 }
  0xb7   :  { %v122_v27 = vadd.f32 %v1491_v36, %v112_v37 }
  0xb8   :  { %v213_v43 = vpop.f32.mrf.mxu1 }
  0xb9   :  { %v223_v54 = vadd.f32 %v213_v43, %v122_v27 }
  0xc4   :  { %v307_v62 = vpop.f32.mrf.mxu2 }
  0xc5   :  { %v321_v0 = vadd.f32 %v307_v62, %v220_v51 }
  0xc7   :  { %vm326_vm15 = vcmp.gt.f32.partialorder %v321_v0, 0.0  ;;  %v331_v5 = vmul.f32 0.01, %v321_v0 }
  0xc9   :  { %v336_v9 = vsel %vm326_vm15, %v321_v0, %v331_v5 }
  0xca   :  { %v532_v11 = vsel %vm1515_vm0, %v336_v9, 0.0  ;;  %vm1563_vm0 = vcmp.lt.s32.totalorder %v515_v56, 16 }
  0xcb   :  { %539 = vst [vmem:[#allocation2 + $0x1] sm:$0xff] %v532_v11  ;;  %vm1201_vm2 = vmpackc.low %vm1563_vm0, %vm1548_vm11 }
  0xcc   :  { %v309_v17 = vpop.f32.mrf.mxu2 }
  0xcd   :  { %v322_v21 = vadd.f32 %v309_v17, %v221_v16 }
  0xcf   :  { %vm327_vm4 = vcmp.gt.f32.partialorder %v322_v21, 0.0  ;;  %v332_v24 = vmul.f32 0.01, %v322_v21 }
  0xd1   :  { %v337_v29 = vsel %vm327_vm4, %v322_v21, %v332_v24  ;;  %vm521_vm4 = vcmp.lt.s32.totalorder %v516_v61, 16  ;;  %v1197_v24 = vld [vmem:[%s1602_s4] ss:$0 sm:$0xff] }
  0xd2   :  { %v533_v33 = vsel %vm1530_vm5, %v337_v29, 0.0  ;;  %v1199_v39 = vpack.c.bf16 %v337_v29, %v336_v9  ;;  %v548_v48 = vld [vmem:[#allocation2] sm:$0xff] }
  0xd3   :  { %540 = vst [vmem:[#allocation2 + $0x9] sm:$0xff] %v533_v33 }
  0xd4   :  { %v312_v38 = vpop.f32.mrf.mxu2  ;;  %1200 = vmatmul.msk.bf16.vlgmr.msrb.gmra.mxu0 %vm1198_vm7, %v1199_v39 }
  0xd5   :  { %v323_v30 = vadd.f32 %v312_v38, %v222_v26 }
  0xd7   :  { %vm328_vm10 = vcmp.gt.f32.partialorder %v323_v30, 0.0  ;;  %v333_v41 = vmul.f32 0.01, %v323_v30 }
  0xd9   :  { %v338_v45 = vsel %vm328_vm10, %v323_v30, %v333_v41 }
  0xda   :  { %v534_v47 = vsel %vm1548_vm11, %v338_v45, 0.0  ;;  %v549_v51 = vld [vmem:[#allocation2 + $0x8] sm:$0xff] }
  0xdb   :  { %541 = vst [vmem:[#allocation2 + $0x11] sm:$0xff] %v534_v47  ;;  %v553_v50 = vpack.c.bf16 %v549_v51, %v548_v48  ;;  %v749_v3 = vld [vmem:[#allocation2 + $0x2] sm:$0xff] }
  0xdc   :  { %v314_v55 = vpop.f32.mrf.mxu2 }
  0xdd   :  { %v324_v57 = vadd.f32 %v314_v55, %v223_v54  ;;  %628 = vmatmul.bf16.vlgmr.msrb.gmra.mxu3 %v553_v50 }
  0xdf   :  { %vm329_vm15 = vcmp.gt.f32.partialorder %v324_v57, 0.0  ;;  %v334_v59 = vmul.f32 0.01, %v324_v57 }
  0xe1   :  { %v339_v63 = vsel %vm329_vm15, %v324_v57, %v334_v59 }
  0xe2   :  { %v535_v1 = vsel %vm1563_vm0, %v339_v63, 0.0  ;;  %v750_v60 = vld [vmem:[#allocation2 + $0xa] sm:$0xff]  ;;  %v1202_v6 = vpack.c.bf16 %v339_v63, %v338_v45 }
  0xe3   :  { %542 = vst [vmem:[#allocation2 + $0x19] sm:$0xff] %v535_v1  ;;  %v754_v28 = vpack.c.bf16 %v750_v60, %v749_v3  ;;  %v550_v7 = vld [vmem:[#allocation2 + $0x10] sm:$0xff] }
  0xe4   :  { %v317_v36 = vpop.f32.mrf.mxu2  ;;  %1203 = vmatmul.msk.bf16.gmra.mxu0 %vm1201_vm2, %v1202_v6 }
  0xe5   :  { %v325_v5 = vadd.f32 %v317_v36, %v224_v4  ;;  %830 = vmatmul.bf16.vlgmr.msrb.gmra.mxu1 %v754_v28 }
  0xe7   :  { %vm330_vm3 = vcmp.gt.f32.partialorder %v325_v5, 0.0  ;;  %v335_v2 = vmul.f32 0.01, %v325_v5 }
  0xe9   :  { %v340_v9 = vsel %vm330_vm3, %v325_v5, %v335_v2 }
  0xea   :  { %v536_v32 = vsel %vm521_vm4, %v340_v9, 0.0  ;;  %v551_v10 = vld [vmem:[#allocation2 + $0x18] sm:$0xff] }
  0xeb   :  { %543 = vst [vmem:[#allocation2 + $0x21] sm:$0x3] %v536_v32  ;;  %v554_v11 = vpack.c.bf16 %v551_v10, %v550_v7  ;;  %v751_v13 = vld [vmem:[#allocation2 + $0x12] sm:$0xff] }
  0xec   :  { %v319_v12 = vpop.f32.mrf.mxu2 }
  0xed   :  { %633 = vmatmul.bf16.gmra.mxu3 %v554_v11 }
  0xf2   :  { %v752_v14 = vld [vmem:[#allocation2 + $0x1a] sm:$0xff]  ;;  %v753_v21 = vld [vmem:[#allocation2 + $0x22] sm:$0x3] }
  0xf3   :  { %v652_v15 = vld [vmem:[#allocation2 + $0x21] sm:$0x3]  ;;  %v755_v16 = vpack.c.bf16 %v752_v14, %v751_v13  ;;  %v756_v22 = vpack.c.bf16 %v753_v21, %v753_v21 }
  0xf4   :  { %v655_v17 = vpack.c.bf16 %v652_v15, %v652_v15  ;;  %v552_v18 = vld [vmem:[#allocation2 + $0x20] sm:$0x3] }
  0xf5   :  { %835 = vmatmul.bf16.gmra.mxu1 %v755_v16  ;;  %v555_v20 = vpack.c.bf16 %v552_v18, %v552_v18 }
  0xf6   :  { %739 = vmatmul.bf16.gmra.mxu0 %v655_v17 }
  0xfd   :  { %638 = vmatmul.bf16.gmra.mxu3 %v555_v20 }
 0x105   :  { %840 = vmatmul.bf16.gmra.mxu1 %v756_v22 }
 0x151   :  { %v730_v8 = vpop.f32.mrf.mxu0 }
 0x159   :  { %v732_v23 = vpop.f32.mrf.mxu0 }
 0x160   :  { %v629_v25 = vpop.f32.mrf.mxu3 }
 0x161   :  { %v643_v19 = vadd.f32 %v1197_v24, %v629_v25  ;;  %v735_v29 = vpop.f32.mrf.mxu0 }
 0x162   :  { %v831_v26 = vpop.f32.mrf.mxu1 }
 0x163   :  { %v744_v31 = vadd.f32 %v730_v8, %v643_v19 }
 0x165   :  { %v845_v33 = vadd.f32 %v831_v26, %v744_v31 }
 0x167   :  { %vm850_vm5 = vcmp.gt.f32.partialorder %v845_v33, 0.0  ;;  %v855_v34 = vmul.f32 0.01, %v845_v33 }
 0x168   :  { %v631_v35 = vpop.f32.mrf.mxu3 }
 0x169   :  { %v860_v37 = vsel %vm850_vm5, %v845_v33, %v855_v34  ;;  %v644_v38 = vadd.f32 %v1197_v24, %v631_v35  ;;  %v737_v30 = vpop.f32.mrf.mxu0 }
 0x16a   :  { %865 = vst [vmem:[%s1603_s5] sm:$0xff] %v860_v37  ;;  %v833_v49 = vpop.f32.mrf.mxu1 }
 0x16b   :  { %v745_v39 = vadd.f32 %v732_v23, %v644_v38 }
 0x16d   :  { %v846_v40 = vadd.f32 %v833_v49, %v745_v39 }
 0x16f   :  { %vm851_vm6 = vcmp.gt.f32.partialorder %v846_v40, 0.0  ;;  %v856_v27 = vmul.f32 0.01, %v846_v40 }
 0x170   :  { %v634_v41 = vpop.f32.mrf.mxu3 }
 0x171   :  { %v861_v42 = vsel %vm851_vm6, %v846_v40, %v856_v27  ;;  %v645_v43 = vadd.f32 %v1197_v24, %v634_v41 }
 0x172   :  { %866 = vst [vmem:[%s1603_s5 + $0x8] sm:$0xff] %v861_v42  ;;  %v836_v44 = vpop.f32.mrf.mxu1 }
 0x173   :  { %v740_v45 = vpop.f32.mrf.mxu0  ;;  %v746_v46 = vadd.f32 %v735_v29, %v645_v43 }
 0x175   :  { %v847_v47 = vadd.f32 %v836_v44, %v746_v46 }
 0x177   :  { %vm852_vm7 = vcmp.gt.f32.partialorder %v847_v47, 0.0  ;;  %v857_v48 = vmul.f32 0.01, %v847_v47 }
 0x178   :  { %v636_v51 = vpop.f32.mrf.mxu3 }
 0x179   :  { %v862_v53 = vsel %vm852_vm7, %v847_v47, %v857_v48  ;;  %v646_v54 = vadd.f32 %v1197_v24, %v636_v51 }
 0x17a   :  { %867 = vst [vmem:[%s1603_s5 + $0xe] sm:$0xfc] %v862_v53  ;;  %v838_v50 = vpop.f32.mrf.mxu1 }
 0x17b   :  { %v742_v55 = vpop.f32.mrf.mxu0  ;;  %v747_v56 = vadd.f32 %v737_v30, %v646_v54 }
 0x17d   :  { %v848_v57 = vadd.f32 %v838_v50, %v747_v56 }
 0x17f   :  { %vm853_vm8 = vcmp.gt.f32.partialorder %v848_v57, 0.0  ;;  %v858_v58 = vmul.f32 0.01, %v848_v57 }
 0x180   :  { %v639_v59 = vpop.f32.mrf.mxu3 }
 0x181   :  { %v863_v62 = vsel %vm853_vm8, %v848_v57, %v858_v58  ;;  %v647_v52 = vadd.f32 %v1197_v24, %v639_v59 }
 0x182   :  { %868 = vst [vmem:[%s1603_s5 + $0x16] sm:$0xff] %v863_v62  ;;  %v841_v63 = vpop.f32.mrf.mxu1 }
 0x183   :  { %v748_v0 = vadd.f32 %v740_v45, %v647_v52 }
 0x185   :  { %v849_v1 = vadd.f32 %v841_v63, %v748_v0 }
 0x187   :  { %vm854_vm9 = vcmp.gt.f32.partialorder %v849_v1, 0.0  ;;  %v859_v3 = vmul.f32 0.01, %v849_v1 }
 0x188   :  { %v641_v60 = vpop.f32.mrf.mxu3 }
 0x189   :  { %v864_v4 = vsel %vm854_vm9, %v849_v1, %v859_v3 }
 0x18a   :  { %869 = vst [vmem:[%s1603_s5 + $0x1e] sm:$0x3] %v864_v4  ;;  %v843_v28 = vpop.f32.mrf.mxu1 }

</bundles_post_ra>
